<compile_context>
chip_gen: v6e
topology: v6e:2x2x1
jax: 0.10.0
libtpu: 0.0.40
codegen_flags: <defaults>
</compile_context>

<pallas_src>
import math
from functools import partial

import jax
import jax.numpy as jnp
from jax.experimental import pallas as pl
from jax.experimental.pallas import tpu as pltpu


def _pe_add_kernel(pos_ref, x_ref, o_ref, *, nb):
    # pos_ref : VMEM (ts, D)      pre-blended positional-encoding rows (x.dtype)
    # x_ref   : VMEM (ts, nb*D)   nb flattened batch entries of the input
    # o_ref   : VMEM (ts, nb*D)
    pos = pos_ref[...]
    if nb > 1:
        # Repeat along lanes so each of the nb batch entries in the block sees the
        # same positional rows.  Lane-axis concat = a few vector copies, no HBM cost.
        pos = jnp.concatenate([pos] * nb, axis=-1)
    o_ref[...] = x_ref[...] + pos
    # TODO(synk): nn.Dropout is identity in eval mode; training-mode dropout would
    # need pltpu.prng_seed / pltpu.prng_random_bits for an in-kernel mask.


def _vmem_capacity_bytes(default=64 << 20):
    """Trace-time VMEM capacity query with a conservative (v7x-safe) fallback."""
    try:
        info = pltpu.get_tpu_info()
        for name in ("vmem_capacity_bytes", "vmem_bytes", "vmem_size_bytes"):
            val = getattr(info, name, None)
            if val:
                return int(val)
    except Exception:
        pass
    return default


def _pick_tiles(S, B, D, itemsize, budget, max_cols=4096, max_rows=1024):
    """Pick (row_tile, batches_per_block), sublane-aligned and inside the budget."""
    sub = max(8, 32 // itemsize)          # sublane quantum: 8 (f32), 16 (bf16), 32 (i8)

    def fit_rows(cols):                   # 2 pipeline bufs * (x blk + out blk) + pos blk
        per_row = 2 * (2 * cols + D) * itemsize
        return budget // max(per_row, 1)

    # Batch (column) tiling only when D is lane-aligned, so chunk seams land on
    # whole batch entries and the pos repeat stays a plain lane-concat.
    nb = B
    if D % 128 == 0 and B > 1:
        nb = max(1, min(B, max_cols // max(D, 1)))
        while nb > 1 and fit_rows(nb * D) < sub:
            nb //= 2

    rows = int(min(fit_rows(nb * D), max_rows, S))
    if rows >= S or S <= sub:
        ts = S                            # full-extent row block: always layout-legal
    else:
        ts = max(sub, (rows // sub) * sub)  # multiple of the sublane quantum
    return ts, nb


def enhanced_positional_encoding(x, pe, learnable_pe, mix_weight):
    """x: (S, B, D) seq-first; pe, learnable_pe: (max_len, D); mix_weight: scalar."""
    S, B, D = x.shape
    itemsize = jnp.dtype(x.dtype).itemsize

    # Blend the two PE tables with the sigmoid-mixed scalar once in the wrapper
    # (tiny (S, D) XLA op) and cast to x.dtype -> a single small side stream.
    mix = jax.nn.sigmoid(jnp.asarray(mix_weight, jnp.float32))
    pos = (mix * pe[:S].astype(jnp.float32)
           + (1.0 - mix) * learnable_pe[:S].astype(jnp.float32)).astype(x.dtype)

    # Lane-dense 2-D view of x: removes the small-batch sublane padding of a
    # (ts, B, D) block (75% waste at B=2).  The reshape is free in XLA.
    C = B * D
    x2 = x.reshape(S, C)

    vmem_cap = _vmem_capacity_bytes()
    budget = min(vmem_cap // 2, 64 << 20)                       # 64 MiB on v5e/v6e, 32 MiB on v7x
    vmem_limit = max(32 << 20, min(vmem_cap * 3 // 4, 100 << 20))  # 96 MiB / 48 MiB

    ts, nb = _pick_tiles(S, B, D, itemsize, budget)
    cols = nb * D
    # Note: no forced >=2-block split — on 1-TC parts it only doubles per-step
    # overhead, and large-S inputs already produce a multi-block grid naturally.
    grid = (pl.cdiv(S, ts), pl.cdiv(B, nb))

    out2 = pl.pallas_call(
        partial(_pe_add_kernel, nb=nb),
        out_shape=jax.ShapeDtypeStruct((S, C), x.dtype),
        grid=grid,
        in_specs=[
            pl.BlockSpec((ts, D), lambda i, j: (i, 0)),      # pos rows; resident across j
            pl.BlockSpec((ts, cols), lambda i, j: (i, j)),   # x block (lane-dense)
        ],
        out_specs=pl.BlockSpec((ts, cols), lambda i, j: (i, j)),
        input_output_aliases={1: 0},                         # out may reuse x2's buffer
        cost_estimate=pl.CostEstimate(
            flops=S * C,
            transcendentals=0,
            bytes_accessed=2 * S * C * itemsize + S * D * itemsize,
        ),
        compiler_params=pltpu.CompilerParams(
            dimension_semantics=("parallel", "arbitrary"),
            vmem_limit_bytes=int(vmem_limit),
        ),
    )(pos, x2)

    return out2.reshape(S, B, D)


def make_sinusoidal_pe(max_len, d_model):
    """Matches the PyTorch buffer construction (kept as (max_len, d_model))."""
    position = jnp.arange(max_len, dtype=jnp.float32)[:, None]
    div_term = jnp.exp(
        jnp.arange(0, d_model, 2, dtype=jnp.float32) * (-math.log(10000.0) / d_model)
    )
    ang = position * div_term                                   # (max_len, d_model//2)
    pe = jnp.zeros((max_len, d_model), jnp.float32)
    pe = pe.at[:, 0::2].set(jnp.sin(ang))
    pe = pe.at[:, 1::2].set(jnp.cos(ang))
    return pe


if __name__ == "__main__":
    # Small shapes consistent with the module's forward; d_model=128 keeps blocks
    # lane-dense, and the flattened (S, B*D) view removes small-batch padding.
    seq_len, batch, d_model, max_len = 8, 2, 128, 64

    key = jax.random.PRNGKey(0)
    kx, klpe = jax.random.split(key)

    x = jax.random.normal(kx, (seq_len, batch, d_model), dtype=jnp.float32)

    # Deterministic "parameters" (synthetic init, mirroring __init__ shapes).
    pe = make_sinusoidal_pe(max_len, d_model)                           # buffer
    learnable_pe = 0.1 * jax.random.normal(klpe, (max_len, d_model), jnp.float32)
    mix_weight = jnp.float32(0.5)

    # Pure-JAX reference computed BEFORE the kernel call (the kernel may alias x's
    # reshaped buffer via input_output_aliases).
    mix = jax.nn.sigmoid(mix_weight)
    pos_ref = mix * pe[:seq_len, None, :] + (1.0 - mix) * learnable_pe[:seq_len, None, :]
    ref = jax.block_until_ready(x + pos_ref)

    out = enhanced_positional_encoding(x, pe, learnable_pe, mix_weight)
    out = jax.block_until_ready(out)

    assert out.shape == (seq_len, batch, d_model)
    assert jnp.allclose(out, ref, atol=1e-6, rtol=1e-6)

    print("KERNEL_OK")
</pallas_src>

<mosaic_0001>
module attributes {stable_mosaic.version = 11 : i64} {
  func.func @_pe_add_kernel(%arg0: i32, %arg1: i32, %arg2: memref<8x128xf32, #tpu.memory_space<vmem>>, %arg3: memref<8x256xf32, #tpu.memory_space<vmem>>, %arg4: memref<8x256xf32, #tpu.memory_space<vmem>>) attributes {dimension_semantics = [#tpu.dimension_semantics<parallel>, #tpu.dimension_semantics<arbitrary>], iteration_bounds = array<i64: 1, 1>, scalar_prefetch = 0 : i64, scratch_operands = 0 : i64, tpu.core_type = #tpu.core_type<tc>, window_params = [{transform_indices = @transform_0, window_bounds = array<i64: 8, 128>}, {transform_indices = @transform_1, window_bounds = array<i64: 8, 256>}, {transform_indices = @transform_2, window_bounds = array<i64: 8, 256>}]} {
    %c0 = arith.constant 0 : index
    %c0_0 = arith.constant 0 : index
    %0 = vector.load %arg2[%c0, %c0_0] : memref<8x128xf32, #tpu.memory_space<vmem>>, vector<8x128xf32>
    %1 = tpu.concatenate %0, %0 in 1 : vector<8x128xf32>, vector<8x128xf32> -> vector<8x256xf32>
    %c0_1 = arith.constant 0 : index
    %c0_2 = arith.constant 0 : index
    %2 = vector.load %arg3[%c0_1, %c0_2] : memref<8x256xf32, #tpu.memory_space<vmem>>, vector<8x256xf32>
    %3 = arith.addf %2, %1 : vector<8x256xf32>
    %c0_3 = arith.constant 0 : index
    %c0_4 = arith.constant 0 : index
    %4 = vector.load %arg4[%c0_3, %c0_4] : memref<8x256xf32, #tpu.memory_space<vmem>>, vector<8x256xf32>
    tpu.vector_store %arg4[%c0_3, %c0_4], %3 {strides = array<i32>} : memref<8x256xf32, #tpu.memory_space<vmem>>, vector<8x256xf32>,
    return
  }
  func.func @transform_0(%arg0: i32, %arg1: i32) -> (i32, i32) {
    %c0_i32 = arith.constant 0 : i32
    %c0_i32_0 = arith.constant 0 : i32
    return %arg0, %c0_i32 : i32, i32
  }
  func.func @transform_1(%arg0: i32, %arg1: i32) -> (i32, i32) {
    %c0_i32 = arith.constant 0 : i32
    return %arg0, %arg1 : i32, i32
  }
  func.func @transform_2(%arg0: i32, %arg1: i32) -> (i32, i32) {
    %c0_i32 = arith.constant 0 : i32
    return %arg0, %arg1 : i32, i32
  }
}

</mosaic_0001>

<bundles_post_ra>
// kernel: tpu_custom_call.1
= control target key start
LH: loop header
LB: loop body
LE: loop exit
PB: predicated region body
PF: predicated region fallthrough
CT: control target
= control target key end

     0   :  { %7 = vsyncpa [#allocation3], 0  ;;  %s118_s0 = inlined_call_operand.vmem [shape: f32[8,128], index: 0, kind: input, shape index: {}]   ;;  %s119_s1 = inlined_call_operand.hbm [shape: f32[8,256], index: 1, kind: input, shape index: {}, may-alias: {1,2}]   ;;  %s120_s2 = inlined_call_operand.hbm [shape: f32[8,256], index: 2, kind: output, shape index: {}, may-alias: {1,2}]  }
   0x1   :  { %8 = vsyncpa [#allocation4], 0  ;;  %s92_s9 = smov [#allocation2]  }
   0x2   :  { %s17_s10 = sshll.u32 %s92_s9, 4  ;;  %s18_s10 = int_to_ptr.vmem [resolvable:$true] %s17_s10 }
   0x3   :  { %s56_s11 = scalar_lea.vmem %s18_s10, 256  ;;  %p61_p1 = scmp.lt.s32.totalorder %s18_s10, %s18_s10 }
   0x4   :  { %p57_p0 = scmp.ne.s32.totalorder %s18_s10, %s56_s11  ;;  %p62_p2 = scmp.lt.s32.totalorder %s56_s11, %s56_s11 }
   0x6   :  { %p63_p3 = por %p62_p2, %p61_p1 }
   0x8   :  { %p64_p4 = pnand %p63_p3, %p57_p0 }
   0xa   :  { %67 = shalt.err (!%p64_p4)
}
   0xb   :  { %20 = dma.hbm_to_vmem [thread:$0]  %s119_s1, 256, %s18_s10, [#allocation3]  }
   0xc   :  { %88 = dma.done.wait [#allocation3], 256  }
   0xd   :  { %89 = vsyncadd [#allocation3], 4294967040  ;;  %s93_s14 = smov [#allocation5]   ;;  %v24_v0 = vld [vmem:[%s118_s0] sm:$0xff]  ;;  %v26_v2 = vld [vmem:[#allocation2 + $0x8] sm:$0xff] }
   0xe   :  { %s37_s15 = sshll.u32 %s93_s14, 4  ;;  %v25_v1 = vld [vmem:[#allocation2] sm:$0xff]  ;;  %v28_v4 = vadd.f32 %v26_v2, %v24_v0  ;;  %s38_s15 = int_to_ptr.vmem [resolvable:$true] %s37_s15 }
   0xf   :  { %v27_v3 = vadd.f32 %v25_v1, %v24_v0  ;;  %s68_s18 = scalar_lea.vmem %s38_s15, 256  ;;  %p73_p6 = scmp.lt.s32.totalorder %s38_s15, %s38_s15 }
  0x10   :  { %30 = vst [vmem:[#allocation5 + $0x8] sm:$0xff] %v28_v4  ;;  %p69_p5 = scmp.ne.s32.totalorder %s38_s15, %s68_s18  ;;  %p74_p7 = scmp.lt.s32.totalorder %s68_s18, %s68_s18 }
  0x11   :  { %29 = vst [vmem:[#allocation5] sm:$0xff] %v27_v3 }
  0x12   :  { %p75_p8 = por %p74_p7, %p73_p6 }
  0x14   :  { %p76_p9 = pnand %p75_p8, %p69_p5 }
  0x16   :  { %79 = shalt.err (!%p76_p9)
}
  0x17   :  { %40 = dma.vmem_to_hbm [thread:$0]  %s38_s15, 256, %s120_s2, [#allocation4]  }
  0x18   :  { %90 = dma.done.wait [#allocation4], 256  }
  0x19   :  { %91 = vsyncadd [#allocation4], 4294967040 }
  0x1a   :  { %44 = vsyncpa [#allocation3], 1 }
  0x1b   :  { %45 = vsyncpa [#allocation4], 1 }

</bundles_post_ra>
